<compile_context>
chip_gen: v6e
topology: v6e:2x2x1
jax: 0.10.0
libtpu: 0.0.40
codegen_flags: <defaults>
</compile_context>

<pallas_src>
import functools
import numpy as np
import jax
import jax.numpy as jnp
from jax.experimental import pallas as pl
from jax.experimental.pallas import tpu as pltpu


# ----------------------------- Pallas kernels -------------------------------
# Operand cast to the compute dtype (w's dtype) happens in-kernel; it is a
# no-op when the wrapper already cast x.

def _mm_acc_bias_kernel(x_ref, w_ref, b_ref, o_ref, acc_ref):
    """K-split path with bias: accumulate over grid axis 2, fuse bias add."""
    @pl.when(pl.program_id(2) == 0)
    def _():
        acc_ref[...] = jnp.zeros_like(acc_ref)

    acc_ref[...] += jnp.dot(x_ref[...].astype(w_ref.dtype), w_ref[...],
                            preferred_element_type=jnp.float32)

    @pl.when(pl.program_id(2) == pl.num_programs(2) - 1)
    def _():
        o_ref[...] = (acc_ref[...] + b_ref[...]).astype(o_ref.dtype)


def _mm_acc_kernel(x_ref, w_ref, o_ref, acc_ref):
    """K-split path, no bias."""
    @pl.when(pl.program_id(2) == 0)
    def _():
        acc_ref[...] = jnp.zeros_like(acc_ref)

    acc_ref[...] += jnp.dot(x_ref[...].astype(w_ref.dtype), w_ref[...],
                            preferred_element_type=jnp.float32)

    @pl.when(pl.program_id(2) == pl.num_programs(2) - 1)
    def _():
        o_ref[...] = acc_ref[...].astype(o_ref.dtype)


def _mm_bias_kernel(x_ref, w_ref, b_ref, o_ref):
    """No-K-split fast path with bias: no acc scratch, no pl.when."""
    o_ref[...] = (jnp.dot(x_ref[...].astype(w_ref.dtype), w_ref[...],
                          preferred_element_type=jnp.float32)
                  + b_ref[...]).astype(o_ref.dtype)


def _mm_kernel(x_ref, w_ref, o_ref):
    """No-K-split fast path, no bias."""
    o_ref[...] = jnp.dot(x_ref[...].astype(w_ref.dtype), w_ref[...],
                         preferred_element_type=jnp.float32).astype(o_ref.dtype)


# ------------------------------ tiling helpers -------------------------------

def _pick_tile(dim, cap, align):
    """Largest block <= cap that is a multiple of `align` and divides `dim`;
    falls back to the full extent (always a legal block)."""
    if dim <= cap:
        return dim
    t = (cap // align) * align
    while t >= align:
        if dim % t == 0:
            return t
        t -= align
    return dim


def pallas_matmul_bias(x, w, bias=None, *, out_dtype=jnp.float32,
                       tm_cap=512, tk_cap=1024, tn_cap=512):
    """Fused y = x @ w (+ bias) with f32 MXU accumulation.

    `w` is expected to already be in the desired operand (compute) dtype and
    padded to a lane-dense N (multiple of 128); `bias`, if given, is f32 of
    shape (N,). Both are prepared once outside the hot path."""
    M, K = x.shape
    K2, N = w.shape
    assert K == K2, (x.shape, w.shape)
    assert N % 128 == 0, "pad N to a lane-dense multiple of 128 before calling"

    tm = _pick_tile(M, tm_cap, 8)
    tk = _pick_tile(K, tk_cap, 128)
    tn = _pick_tile(N, tn_cap, 128)

    # Megacore guard (v7x: 2 TensorCores): keep >= 2 parallel output tiles when
    # the shape allows it so a TC isn't left idle.
    if (M // tm) * (N // tn) < 2:
        if N // tn < 2 and tn > 128 and N >= 256 and N % 128 == 0:
            tn = _pick_tile(N, max(128, tn // 2), 128)
        elif M // tm < 2 and tm > 8 and M >= 16 and M % 8 == 0:
            tm = _pick_tile(M, max(8, tm // 2), 8)

    has_bias = bias is not None
    compute_dtype = w.dtype

    # Cast activations in the wrapper only when the halved per-tile DMA is
    # reused enough times (>= 3 passes over x along the N grid); otherwise the
    # kernel casts each x tile on the fly and we skip an extra HBM pass.
    if x.dtype != compute_dtype and (N // tn) >= 3:
        x = x.astype(compute_dtype)

    k_steps = K // tk

    # Per-step VMEM footprint estimate (double-buffered inputs/outputs + acc).
    x_item = jnp.dtype(x.dtype).itemsize
    w_item = jnp.dtype(w.dtype).itemsize
    o_item = jnp.dtype(out_dtype).itemsize
    est = 2 * tm * tk * x_item + 2 * tk * tn * w_item + 2 * tm * tn * o_item
    if has_bias:
        est += 2 * tn * 4
    if k_steps > 1:
        est += tm * tn * 4
    # Raise v5e's 16 MiB scoped-VMEM default; stay within v7x's 64 MiB physical.
    vmem_limit = int(min(max(2 * est, 32 * 1024 * 1024), 64 * 1024 * 1024))

    out_shape = jax.ShapeDtypeStruct((M, N), out_dtype)
    bias_ops = (bias.reshape(1, N).astype(jnp.float32),) if has_bias else ()

    if k_steps == 1:
        # Fast path: the whole reduction fits one block -> no acc scratch.
        in_specs = [pl.BlockSpec((tm, K), lambda i, j: (i, 0)),
                    pl.BlockSpec((K, tn), lambda i, j: (0, j))]
        if has_bias:
            in_specs.append(pl.BlockSpec((1, tn), lambda i, j: (0, j)))
        kernel = _mm_bias_kernel if has_bias else _mm_kernel
        return pl.pallas_call(
            kernel,
            out_shape=out_shape,
            grid_spec=pltpu.PrefetchScalarGridSpec(
                num_scalar_prefetch=0,
                grid=(M // tm, N // tn),
                in_specs=in_specs,
                out_specs=pl.BlockSpec((tm, tn), lambda i, j: (i, j)),
            ),
            compiler_params=pltpu.CompilerParams(
                dimension_semantics=("parallel", "parallel"),
                vmem_limit_bytes=vmem_limit),
        )(x, w, *bias_ops)

    # K-split path: f32 accumulator in VMEM scratch, K is the trailing
    # "arbitrary" reduction axis.
    in_specs = [pl.BlockSpec((tm, tk), lambda i, j, k: (i, k)),
                pl.BlockSpec((tk, tn), lambda i, j, k: (k, j))]
    if has_bias:
        in_specs.append(pl.BlockSpec((1, tn), lambda i, j, k: (0, j)))
    kernel = _mm_acc_bias_kernel if has_bias else _mm_acc_kernel
    return pl.pallas_call(
        kernel,
        out_shape=out_shape,
        grid_spec=pltpu.PrefetchScalarGridSpec(
            num_scalar_prefetch=0,
            grid=(M // tm, N // tn, k_steps),
            in_specs=in_specs,
            out_specs=pl.BlockSpec((tm, tn), lambda i, j, k: (i, j)),
            scratch_shapes=[pltpu.VMEM((tm, tn), jnp.float32)],
        ),
        compiler_params=pltpu.CompilerParams(
            dimension_semantics=("parallel", "parallel", "arbitrary"),
            vmem_limit_bytes=vmem_limit),
    )(x, w, *bias_ops)


# ------------------------ TTLinear forward (tt_dot) -------------------------

def tt_linear_forward_ref(x, cores, bias, in_modes, out_modes, ranks):
    """Pure-JAX mirror of PyTorch tt_dot (validation + dense pre-contraction)."""
    dim = len(in_modes)
    res = x.reshape(-1, int(np.prod(in_modes))).T
    for ii in range(dim):
        res = res.reshape(ranks[ii] * in_modes[ii], -1)
        res = jnp.matmul(cores[ii], res)
        res = res.reshape(out_modes[ii], -1).T
    res = res.reshape(-1, int(np.prod(out_modes)))
    if bias is not None:
        res = res + bias
    return res


def tt_cores_to_dense(cores, in_modes, out_modes, ranks):
    """Contract the TT cores into the dense (prod_in, prod_out) matrix of the
    linear map: tt_dot is linear in x, so pushing the identity through the
    exact reference chain yields W with tt_dot(x) == x @ W."""
    prod_in = int(np.prod(in_modes))
    eye = jnp.eye(prod_in, dtype=jnp.float32)
    return tt_linear_forward_ref(eye, cores, None, in_modes, out_modes, ranks)


def prepare_tt_linear(cores, bias, in_modes, out_modes, ranks, *,
                      compute_dtype=jnp.bfloat16):
    """Weights-only preprocessing, run ONCE per weight update (NOT in the hot
    path): densify the TT cores, cast to the compute dtype, pad N to a
    lane-dense multiple of 128."""
    assert len(in_modes) == len(out_modes) == len(ranks) - 1
    prod_in = int(np.prod(in_modes))
    prod_out = int(np.prod(out_modes))
    w = tt_cores_to_dense(cores, in_modes, out_modes, ranks)   # (prod_in, prod_out) f32
    n_pad = -(-prod_out // 128) * 128
    if n_pad != prod_out:
        w = jnp.pad(w, ((0, 0), (0, n_pad - prod_out)))
    w = w.astype(compute_dtype)
    b = None
    if bias is not None:
        b = bias.astype(jnp.float32)
        if n_pad != prod_out:
            b = jnp.pad(b, (0, n_pad - prod_out))
    return {"w": w, "bias": b, "prod_in": prod_in, "prod_out": prod_out,
            "n_pad": n_pad}


def tt_linear_apply(x, w, bias, *, prod_in, prod_out, n_pad,
                    out_dtype=jnp.float32, tm_cap=512, tk_cap=1024, tn_cap=512):
    """Pallas-backed TTLinear.forward using prepared (cached) dense weights."""
    x2 = x.reshape(-1, prod_in)
    y = pallas_matmul_bias(x2, w, bias, out_dtype=out_dtype,
                           tm_cap=tm_cap, tk_cap=tk_cap, tn_cap=tn_cap)
    if n_pad != prod_out:
        y = y[:, :prod_out]
    return y


# --------------------------- parameter creation ------------------------------

def init_tt_linear_params(key, in_modes, out_modes, ranks, use_bias=True):
    """Matches TTLinear.reset_parameters (reset_normal + zero bias)."""
    dim = len(in_modes)
    const = float(((0.05 ** 2 / np.prod(ranks)) ** (1.0 / (len(ranks) - 1))) ** 0.5)
    cores = []
    for ii in range(dim):
        key, sub = jax.random.split(key)
        shape = (out_modes[ii] * ranks[ii + 1], in_modes[ii] * ranks[ii])
        cores.append(const * jax.random.normal(sub, shape, dtype=jnp.float32))
    bias = jnp.zeros((int(np.prod(out_modes)),), jnp.float32) if use_bias else None
    return cores, bias


# ----------------------------------- main ------------------------------------

def _run_config(key, in_modes, out_modes, ranks, batch, *, use_bias=True,
                tile_caps=None, check_bf16_out=False):
    prod_in = int(np.prod(in_modes))
    prod_out = int(np.prod(out_modes))
    caps = dict(tile_caps or {})

    key, kx, kb = jax.random.split(key, 3)
    x = jax.random.normal(kx, (batch, prod_in), dtype=jnp.float32)
    cores, bias = init_tt_linear_params(key, in_modes, out_modes, ranks, use_bias)
    if use_bias:
        # non-zero bias so the fused bias epilogue is genuinely exercised
        bias = 0.1 * jax.random.normal(kb, bias.shape, dtype=jnp.float32)

    ref = jax.block_until_ready(
        tt_linear_forward_ref(x, cores, bias, in_modes, out_modes, ranks))

    def make_fwd(prep, out_dtype):
        return jax.jit(functools.partial(
            tt_linear_apply, prod_in=prep["prod_in"], prod_out=prep["prod_out"],
            n_pad=prep["n_pad"], out_dtype=out_dtype, **caps))

    # Default path: bf16 operands, f32 accumulation + f32 output.
    prep_bf16 = prepare_tt_linear(cores, bias, in_modes, out_modes, ranks,
                                  compute_dtype=jnp.bfloat16)
    out_bf16 = jax.block_until_ready(
        make_fwd(prep_bf16, jnp.float32)(x, prep_bf16["w"], prep_bf16["bias"]))
    assert out_bf16.shape == (batch, prod_out), out_bf16.shape
    np.testing.assert_allclose(np.asarray(out_bf16), np.asarray(ref),
                               rtol=5e-2, atol=5e-2)

    # f32-operand path: tight tolerance to pin the kernel math exactly.
    prep_f32 = prepare_tt_linear(cores, bias, in_modes, out_modes, ranks,
                                 compute_dtype=jnp.float32)
    out_f32 = jax.block_until_ready(
        make_fwd(prep_f32, jnp.float32)(x, prep_f32["w"], prep_f32["bias"]))
    np.testing.assert_allclose(np.asarray(out_f32), np.asarray(ref),
                               rtol=1e-4, atol=1e-4)

    if check_bf16_out:
        # bf16 output option (halves the (M,N) HBM writeback).
        out_b = jax.block_until_ready(
            make_fwd(prep_bf16, jnp.bfloat16)(x, prep_bf16["w"], prep_bf16["bias"]))
        np.testing.assert_allclose(np.asarray(out_b, dtype=np.float32),
                                   np.asarray(ref), rtol=5e-2, atol=5e-2)


if __name__ == "__main__":
    key = jax.random.PRNGKey(0)

    # Small config (original toy TTLinear sizes): prod_out=64 exercises the
    # lane-dense N padding (64 -> 128) and the no-K-split fast path.
    key, k1 = jax.random.split(key)
    _run_config(k1, in_modes=(4, 4, 4), out_modes=(4, 4, 4),
                ranks=(1, 2, 2, 1), batch=8, use_bias=True)

    # Larger config: lane-dense 512-wide output, fast path, megacore tn split,
    # plus a bf16-output check.
    key, k2 = jax.random.split(key)
    _run_config(k2, in_modes=(8, 8, 8), out_modes=(8, 8, 8),
                ranks=(1, 4, 4, 1), batch=256, use_bias=True,
                check_bf16_out=True)

    # Same shapes, no bias, with tile caps forced small to exercise the
    # K-split accumulator path and a multi-tile M grid.
    key, k3 = jax.random.split(key)
    _run_config(k3, in_modes=(8, 8, 8), out_modes=(8, 8, 8),
                ranks=(1, 4, 4, 1), batch=256, use_bias=False,
                tile_caps=dict(tm_cap=128, tk_cap=256, tn_cap=512))

    print("KERNEL_OK")
</pallas_src>

<mosaic_0001>
module attributes {stable_mosaic.version = 11 : i64} {
  func.func @_mm_bias_kernel(%arg0: i32, %arg1: i32, %arg2: memref<8x64xf32, #tpu.memory_space<vmem>>, %arg3: memref<64x128xbf16, #tpu.memory_space<vmem>>, %arg4: memref<1x128xf32, #tpu.memory_space<vmem>>, %arg5: memref<8x128xf32, #tpu.memory_space<vmem>>) attributes {dimension_semantics = [#tpu.dimension_semantics<parallel>, #tpu.dimension_semantics<parallel>], iteration_bounds = array<i64: 1, 1>, scalar_prefetch = 0 : i64, scratch_operands = 0 : i64, tpu.core_type = #tpu.core_type<tc>, window_params = [{transform_indices = @transform_0, window_bounds = array<i64: 8, 64>}, {transform_indices = @transform_1, window_bounds = array<i64: 64, 128>}, {transform_indices = @transform_2, window_bounds = array<i64: 1, 128>}, {transform_indices = @transform_3, window_bounds = array<i64: 8, 128>}]} {
    %c0 = arith.constant 0 : index
    %c0_0 = arith.constant 0 : index
    %0 = vector.load %arg2[%c0, %c0_0] : memref<8x64xf32, #tpu.memory_space<vmem>>, vector<8x64xf32>
    %1 = arith.truncf %0 : vector<8x64xf32> to vector<8x64xbf16>
    %c0_1 = arith.constant 0 : index
    %c0_2 = arith.constant 0 : index
    %2 = vector.load %arg3[%c0_1, %c0_2] : memref<64x128xbf16, #tpu.memory_space<vmem>>, vector<64x128xbf16>
    %cst = arith.constant dense<0.000000e+00> : vector<8x128xf32>
    %3 = tpu.matmul %1, %2, %cst {dimension_numbers = #tpu.dot_dimension_numbers<[1], [0], [0], [1], [0, 0, 1, 1], [], []>} : vector<8x64xbf16>, vector<64x128xbf16>, vector<8x128xf32> -> vector<8x128xf32>
    %c0_3 = arith.constant 0 : index
    %c0_4 = arith.constant 0 : index
    %4 = vector.load %arg4[%c0_3, %c0_4] : memref<1x128xf32, #tpu.memory_space<vmem>>, vector<1x128xf32>
    %5 = vector.broadcast %4 : vector<1x128xf32> to vector<8x128xf32>
    %6 = arith.addf %3, %5 : vector<8x128xf32>
    %c0_5 = arith.constant 0 : index
    %c0_6 = arith.constant 0 : index
    %7 = vector.load %arg5[%c0_5, %c0_6] : memref<8x128xf32, #tpu.memory_space<vmem>>, vector<8x128xf32>
    tpu.vector_store %arg5[%c0_5, %c0_6], %6 {strides = array<i32>} : memref<8x128xf32, #tpu.memory_space<vmem>>, vector<8x128xf32>,
    return
  }
  func.func @transform_0(%arg0: i32, %arg1: i32) -> (i32, i32) {
    %c0_i32 = arith.constant 0 : i32
    %c0_i32_0 = arith.constant 0 : i32
    return %arg0, %c0_i32 : i32, i32
  }
  func.func @transform_1(%arg0: i32, %arg1: i32) -> (i32, i32) {
    %c0_i32 = arith.constant 0 : i32
    %c0_i32_0 = arith.constant 0 : i32
    return %c0_i32, %arg1 : i32, i32
  }
  func.func @transform_2(%arg0: i32, %arg1: i32) -> (i32, i32) {
    %c0_i32 = arith.constant 0 : i32
    %c0_i32_0 = arith.constant 0 : i32
    return %c0_i32, %arg1 : i32, i32
  }
  func.func @transform_3(%arg0: i32, %arg1: i32) -> (i32, i32) {
    %c0_i32 = arith.constant 0 : i32
    return %arg0, %arg1 : i32, i32
  }
}

</mosaic_0001>

<bundles_post_ra>
// kernel: tt_linear_apply.1
= control target key start
LH: loop header
LB: loop body
LE: loop exit
PB: predicated region body
PF: predicated region fallthrough
CT: control target
= control target key end

     0   :  { %8 = vsyncpa [#allocation3], 0  ;;  %s283_s0 = inlined_call_operand.hbm [shape: f32[8,64], index: 0, kind: input, shape index: {}]   ;;  %s284_s1 = inlined_call_operand.hbm [shape: bf16[64,128], index: 1, kind: input, shape index: {}]   ;;  %s285_s2 = inlined_call_operand.vmem [shape: f32[1,128], index: 2, kind: input, shape index: {}]   ;;  %s286_s3 = inlined_call_operand.hbm [shape: f32[8,128], index: 3, kind: output, shape index: {}]  }
   0x1   :  { %9 = vsyncpa [#allocation6], 0 }
   0x2   :  { %10 = vsyncpa [#allocation4], 0  ;;  %s244_s12 = smov [#allocation2]   ;;  %s245_s14 = smov [#allocation5]  }
   0x3   :  { %s17_s13 = sshll.u32 %s244_s12, 4  ;;  %s26_s15 = sshll.u32 %s245_s14, 4  ;;  %s18_s13 = int_to_ptr.vmem [resolvable:$true] %s17_s13  ;;  %s27_s15 = int_to_ptr.vmem [resolvable:$true] %s26_s15 }
   0x4   :  { %s186_s16 = scalar_lea.vmem %s18_s13, 128  ;;  %p191_p1 = scmp.lt.s32.totalorder %s18_s13, %s18_s13 }
   0x5   :  { %p187_p0 = scmp.ne.s32.totalorder %s18_s13, %s186_s16  ;;  %p192_p2 = scmp.lt.s32.totalorder %s186_s16, %s186_s16 }
   0x7   :  { %p193_p3 = por %p192_p2, %p191_p1 }
   0x9   :  { %p194_p4 = pnand %p193_p3, %p187_p0 }
   0xb   :  { %197 = shalt.err (!%p194_p4)
}
   0xc   :  { %20 = dma.hbm_to_vmem [thread:$0]  %s283_s0, 128, %s18_s13, [#allocation3]  }
   0xd   :  { %s206_s19 = scalar_lea.vmem %s27_s15, 512  ;;  %p211_p6 = scmp.lt.s32.totalorder %s27_s15, %s27_s15 }
   0xe   :  { %p207_p5 = scmp.ne.s32.totalorder %s27_s15, %s206_s19  ;;  %p212_p7 = scmp.lt.s32.totalorder %s206_s19, %s206_s19 }
  0x10   :  { %p213_p8 = por %p212_p7, %p211_p6 }
  0x12   :  { %p214_p9 = pnand %p213_p8, %p207_p5 }
  0x14   :  { %217 = shalt.err (!%p214_p9)
}
  0x15   :  { %s246_s20 = smov 64   ;;  %s247_s21 = smov 4  }
  0x16   :  { %32 = dma.hbm_to_vmem [thread:$0]  %s284_s1, 512, %s27_s15, [#allocation6], %s246_s20, %s246_s20, %s247_s21  }
  0x17   :  { %238 = dma.done.wait [#allocation3], 128  }
  0x18   :  { %239 = vsyncadd [#allocation3], 4294967168 }
  0x19   :  { %240 = dma.done.wait [#allocation6], 512  }
  0x1a   :  { %241 = vsyncadd [#allocation6], 4294966784  ;;  %v248_v0 = vmov 0.0   ;;  %vm249_vm0 = vmmov 0   ;;  %v174_v1 = vld [vmem:[#allocation5 + $0x18] sm:$0xff]   ;;  %v175_v2 = vld [vmem:[#allocation5 + $0x10] sm:$0xff]  }
  0x1b   :  { %155 = vmatprep.subr.bf16.mxu0 %v248_v0  ;;  %163 = vmatprep.mubr.msk.bf16.mxu0 %vm249_vm0, %v248_v0  ;;  %v176_v3 = vld [vmem:[#allocation5 + $0x8] sm:$0xff]   ;;  %v177_v4 = vld [vmem:[#allocation5] sm:$0xff]   ;;  %v42_v5 = vld [vmem:[#allocation2] sm:$0xff]  ;;  %vm83_vm1 = vcmask 523264   ;;  %s250_s24 = smov [#allocation7]  }
  0x1c   :  { %156 = vmatpush3.bf16.msra.mxu0 %v174_v1  ;;  %v43_v6 = vpack.c.bf16 %v42_v5, %v42_v5  ;;  %v144_v7 = vld [vmem:[%s285_s2] ss:$0 sm:$0xff]  ;;  %s134_s25 = sshll.u32 %s250_s24, 4  ;;  %s135_s25 = int_to_ptr.vmem [resolvable:$true] %s134_s25 }
  0x1d   :  { %157 = vmatprep.subr.bf16.mxu0 %v248_v0  ;;  %s218_s26 = scalar_lea.vmem %s135_s25, 128  ;;  %p223_p11 = scmp.lt.s32.totalorder %s135_s25, %s135_s25 }
  0x1e   :  { %p219_p10 = scmp.ne.s32.totalorder %s135_s25, %s218_s26  ;;  %p224_p12 = scmp.lt.s32.totalorder %s218_s26, %s218_s26 }
  0x20   :  { %158 = vmatpush3.bf16.msra.mxu0 %v175_v2  ;;  %p225_p13 = por %p224_p12, %p223_p11 }
  0x21   :  { %159 = vmatprep.subr.bf16.mxu0 %v248_v0 }
  0x22   :  { %p226_p0 = pnand %p225_p13, %p219_p10 }
  0x24   :  { %160 = vmatpush3.bf16.msra.mxu0 %v176_v3 }
  0x25   :  { %161 = vmatprep.subr.bf16.mxu0 %v248_v0 }
  0x28   :  { %162 = vmatpush3.bf16.msra.mxu0 %v177_v4 }
  0x2b   :  { %164 = vmatmul.mubr.msk.bf16.vlgmr.msra.gmra.mxu0 %vm83_vm1, %v43_v6 }
  0xeb   :  { %v121_v8 = vpop.f32.mrf.mxu0 }
  0xec   :  { %v122_v9 = vadd.f32 %v144_v7, %v121_v8 }
  0xed   :  { %v165_v10 = vpop.f32.mrf.mxu0 }
  0xee   :  { %127 = vst [vmem:[#allocation7] sm:$0xff] %v122_v9 }
  0xef   :  { %v124_v11 = vpop.f32.mrf.mxu0 }
  0xf0   :  { %229 = shalt.err (!%p226_p0)
}
  0xf1   :  { %137 = dma.vmem_to_hbm [thread:$0]  %s135_s25, 128, %s286_s3, [#allocation4]   ;;  %v166_v12 = vpop.f32.mrf.mxu0 }
  0xf2   :  { %242 = dma.done.wait [#allocation4], 128  }
  0xf3   :  { %243 = vsyncadd [#allocation4], 4294967168 }
  0xf4   :  { %141 = vsyncpa [#allocation3], 1 }
  0xf5   :  { %142 = vsyncpa [#allocation6], 1 }
  0xf6   :  { %143 = vsyncpa [#allocation4], 1 }

</bundles_post_ra>
